<compile_context>
chip_gen: v6e
topology: v6e:2x2x1
jax: 0.10.0
libtpu: 0.0.40
codegen_flags: <defaults>
</compile_context>

<pallas_src>
import functools

import jax
import jax.numpy as jnp
from jax.experimental import pallas as pl
from jax.experimental.pallas import tpu as pltpu

HIDDEN1_PAD = 512   # 400 padded to a multiple of 128
HIDDEN2_PAD = 384   # 300 padded to a multiple of 128
LANE = 128
SUBLANE = 8


def _round_up(n, m):
    return ((n + m - 1) // m) * m


def actor_kernel(ma_ref, x_ref, w1_ref, b1_ref, w2_ref, b2_ref, w3_ref, b3_ref,
                 out_ref):
    max_action = ma_ref[0, 0]

    # Layer 1: (TB, S) @ (S, 512) -> f32 acc, bias + relu in f32
    h1 = jnp.dot(x_ref[...].astype(jnp.bfloat16), w1_ref[...],
                 preferred_element_type=jnp.float32)
    h1 = jnp.maximum(h1 + b1_ref[...], 0.0)

    # Layer 2: (TB, 512) @ (512, 384)
    h2 = jnp.dot(h1.astype(jnp.bfloat16), w2_ref[...],
                 preferred_element_type=jnp.float32)
    h2 = jnp.maximum(h2 + b2_ref[...], 0.0)

    # Layer 3: (TB, 384) @ (384, 128) -> max_action * tanh, lane-dense store
    h3 = jnp.dot(h2.astype(jnp.bfloat16), w3_ref[...],
                 preferred_element_type=jnp.float32)
    out_ref[...] = (max_action * jnp.tanh(h3 + b3_ref[...])).astype(out_ref.dtype)


def actor_forward(x, packed_params, max_action, action_dim):
    """Run the Actor MLP as a batch-tiled Pallas kernel with resident weights."""
    w1, b1, w2, b2, w3, b3 = packed_params
    batch, state_dim = x.shape
    a_pad = w3.shape[1]

    # Batch tile: multiple of 8 sublanes, capped at 256 rows.
    tb = min(256, _round_up(batch, SUBLANE))
    b_pad = _round_up(batch, tb)
    if b_pad != batch:
        x = jnp.pad(x, ((0, b_pad - batch), (0, 0)))
    grid = (b_pad // tb,)

    # Weights/biases: full-array blocks with a constant index_map -> fetched
    # once, resident in VMEM across all grid iterations.
    def resident(arr):
        return pl.BlockSpec(arr.shape, lambda i: (0, 0))

    ma = jnp.full((1, 1), max_action, jnp.float32)

    out_padded = pl.pallas_call(
        actor_kernel,
        out_shape=jax.ShapeDtypeStruct((b_pad, a_pad), jnp.float32),
        grid=grid,
        in_specs=[
            pl.BlockSpec(memory_space=pltpu.MemorySpace.SMEM),      # max_action
            pl.BlockSpec((tb, state_dim), lambda i: (i, 0)),        # x rows
            resident(w1), resident(b1),
            resident(w2), resident(b2),
            resident(w3), resident(b3),
        ],
        out_specs=pl.BlockSpec((tb, a_pad), lambda i: (i, 0)),
        compiler_params=pltpu.CompilerParams(
            dimension_semantics=("parallel",),
            vmem_limit_bytes=32 * 1024 * 1024,
        ),
    )(ma, x, w1, b1, w2, b2, w3, b3)

    return out_padded[:batch, :action_dim]


def init_actor_params(key, state_dim, action_dim):
    """fp32, unpadded params mimicking PyTorch nn.Linear default init
    (uniform +/- 1/sqrt(fan_in)); weight layout is (in, out)."""
    def linear(key, fan_in, fan_out):
        kw, kb = jax.random.split(key)
        bound = 1.0 / jnp.sqrt(jnp.float32(fan_in))
        w = jax.random.uniform(kw, (fan_in, fan_out), jnp.float32, -bound, bound)
        b = jax.random.uniform(kb, (1, fan_out), jnp.float32, -bound, bound)
        return w, b

    k1, k2, k3 = jax.random.split(key, 3)
    w1, b1 = linear(k1, state_dim, 400)
    w2, b2 = linear(k2, 400, 300)
    w3, b3 = linear(k3, 300, action_dim)
    return (w1, b1, w2, b2, w3, b3)


def pack_actor_params(params):
    """Pad hidden/action dims to multiples of 128 and cast weights to bf16.
    Zero padding leaves the math identical; biases stay fp32."""
    w1, b1, w2, b2, w3, b3 = params
    state_dim = w1.shape[0]
    action_dim = w3.shape[1]
    a_pad = _round_up(action_dim, LANE)

    def pad2(a, rows, cols):
        return jnp.pad(a, ((0, rows - a.shape[0]), (0, cols - a.shape[1])))

    w1p = pad2(w1, state_dim, HIDDEN1_PAD).astype(jnp.bfloat16)
    b1p = pad2(b1, 1, HIDDEN1_PAD)
    w2p = pad2(w2, HIDDEN1_PAD, HIDDEN2_PAD).astype(jnp.bfloat16)
    b2p = pad2(b2, 1, HIDDEN2_PAD)
    w3p = pad2(w3, HIDDEN2_PAD, a_pad).astype(jnp.bfloat16)
    b3p = pad2(b3, 1, a_pad)
    return (w1p, b1p, w2p, b2p, w3p, b3p)


def actor_reference(x, params, max_action):
    """Pure-JAX fp32 reference for correctness checking."""
    w1, b1, w2, b2, w3, b3 = params
    h = jnp.maximum(x @ w1 + b1, 0.0)
    h = jnp.maximum(h @ w2 + b2, 0.0)
    return max_action * jnp.tanh(h @ w3 + b3)


if __name__ == "__main__":
    state_dim = 16
    action_dim = 4
    max_action = 2.0

    key = jax.random.PRNGKey(0)
    k_params, k_x1, k_x2 = jax.random.split(key, 3)

    params = init_actor_params(k_params, state_dim, action_dim)
    packed = pack_actor_params(params)

    # Small case (batch=2): single grid point, partial-batch padding path.
    x_small = jax.random.normal(k_x1, (2, state_dim), jnp.float32)
    out_small = jax.block_until_ready(
        actor_forward(x_small, packed, max_action, action_dim))
    ref_small = actor_reference(x_small, params, max_action)
    assert out_small.shape == (2, action_dim), out_small.shape
    # bf16 MXU inputs -> loosened tolerance vs fp32 reference.
    assert jnp.allclose(out_small, ref_small, atol=5e-2, rtol=5e-2), \
        "mismatch vs reference (batch=2)"

    # Larger case (batch=300): exercises multi-step grid + batch padding/slice.
    x_big = jax.random.normal(k_x2, (300, state_dim), jnp.float32)
    out_big = jax.block_until_ready(
        actor_forward(x_big, packed, max_action, action_dim))
    ref_big = actor_reference(x_big, params, max_action)
    assert out_big.shape == (300, action_dim), out_big.shape
    assert jnp.allclose(out_big, ref_big, atol=5e-2, rtol=5e-2), \
        "mismatch vs reference (batch=300)"

    print("KERNEL_OK")
</pallas_src>

<mosaic_0001>
module attributes {stable_mosaic.version = 11 : i64} {
  func.func @actor_kernel(%arg0: i32, %arg1: memref<1x1xf32, #tpu.memory_space<smem>>, %arg2: memref<8x16xf32, #tpu.memory_space<vmem>>, %arg3: memref<16x512xbf16, #tpu.memory_space<vmem>>, %arg4: memref<1x512xf32, #tpu.memory_space<vmem>>, %arg5: memref<512x384xbf16, #tpu.memory_space<vmem>>, %arg6: memref<1x384xf32, #tpu.memory_space<vmem>>, %arg7: memref<384x128xbf16, #tpu.memory_space<vmem>>, %arg8: memref<1x128xf32, #tpu.memory_space<vmem>>, %arg9: memref<8x128xf32, #tpu.memory_space<vmem>>) attributes {dimension_semantics = [#tpu.dimension_semantics<parallel>], iteration_bounds = array<i64: 1>, scalar_prefetch = 0 : i64, scratch_operands = 0 : i64, tpu.core_type = #tpu.core_type<tc>, window_params = [{transform_indices = @transform_0, window_bounds = array<i64: 1, 1>}, {transform_indices = @transform_1, window_bounds = array<i64: 8, 16>}, {pipeline_mode = #tpu.pipeline_mode<synchronous>, transform_indices = @transform_2, window_bounds = array<i64: 16, 512>}, {pipeline_mode = #tpu.pipeline_mode<synchronous>, transform_indices = @transform_3, window_bounds = array<i64: 1, 512>}, {pipeline_mode = #tpu.pipeline_mode<synchronous>, transform_indices = @transform_4, window_bounds = array<i64: 512, 384>}, {pipeline_mode = #tpu.pipeline_mode<synchronous>, transform_indices = @transform_5, window_bounds = array<i64: 1, 384>}, {pipeline_mode = #tpu.pipeline_mode<synchronous>, transform_indices = @transform_6, window_bounds = array<i64: 384, 128>}, {pipeline_mode = #tpu.pipeline_mode<synchronous>, transform_indices = @transform_7, window_bounds = array<i64: 1, 128>}, {transform_indices = @transform_8, window_bounds = array<i64: 8, 128>}]} {
    %c0 = arith.constant 0 : index
    %c0_0 = arith.constant 0 : index
    %0 = memref.load %arg1[%c0, %c0_0] : memref<1x1xf32, #tpu.memory_space<smem>>
    %c0_1 = arith.constant 0 : index
    %c0_2 = arith.constant 0 : index
    %1 = vector.load %arg2[%c0_1, %c0_2] : memref<8x16xf32, #tpu.memory_space<vmem>>, vector<8x16xf32>
    %2 = arith.truncf %1 : vector<8x16xf32> to vector<8x16xbf16>
    %c0_3 = arith.constant 0 : index
    %c0_4 = arith.constant 0 : index
    %3 = vector.load %arg3[%c0_3, %c0_4] : memref<16x512xbf16, #tpu.memory_space<vmem>>, vector<16x512xbf16>
    %cst = arith.constant dense<0.000000e+00> : vector<8x512xf32>
    %4 = tpu.matmul %2, %3, %cst {dimension_numbers = #tpu.dot_dimension_numbers<[1], [0], [0], [1], [0, 0, 1, 1], [], []>} : vector<8x16xbf16>, vector<16x512xbf16>, vector<8x512xf32> -> vector<8x512xf32>
    %c0_5 = arith.constant 0 : index
    %c0_6 = arith.constant 0 : index
    %5 = vector.load %arg4[%c0_5, %c0_6] : memref<1x512xf32, #tpu.memory_space<vmem>>, vector<1x512xf32>
    %6 = vector.broadcast %5 : vector<1x512xf32> to vector<8x512xf32>
    %7 = arith.addf %4, %6 : vector<8x512xf32>
    %cst_7 = arith.constant 0.000000e+00 : f32
    %8 = vector.broadcast %cst_7 : f32 to vector<8x512xf32>
    %9 = arith.maximumf %7, %8 : vector<8x512xf32>
    %10 = arith.truncf %9 : vector<8x512xf32> to vector<8x512xbf16>
    %c0_8 = arith.constant 0 : index
    %c0_9 = arith.constant 0 : index
    %11 = vector.load %arg5[%c0_8, %c0_9] : memref<512x384xbf16, #tpu.memory_space<vmem>>, vector<512x384xbf16>
    %cst_10 = arith.constant dense<0.000000e+00> : vector<8x384xf32>
    %12 = tpu.matmul %10, %11, %cst_10 {dimension_numbers = #tpu.dot_dimension_numbers<[1], [0], [0], [1], [0, 0, 1, 1], [], []>} : vector<8x512xbf16>, vector<512x384xbf16>, vector<8x384xf32> -> vector<8x384xf32>
    %c0_11 = arith.constant 0 : index
    %c0_12 = arith.constant 0 : index
    %13 = vector.load %arg6[%c0_11, %c0_12] : memref<1x384xf32, #tpu.memory_space<vmem>>, vector<1x384xf32>
    %14 = vector.broadcast %13 : vector<1x384xf32> to vector<8x384xf32>
    %15 = arith.addf %12, %14 : vector<8x384xf32>
    %cst_13 = arith.constant 0.000000e+00 : f32
    %16 = vector.broadcast %cst_13 : f32 to vector<8x384xf32>
    %17 = arith.maximumf %15, %16 : vector<8x384xf32>
    %18 = arith.truncf %17 : vector<8x384xf32> to vector<8x384xbf16>
    %c0_14 = arith.constant 0 : index
    %c0_15 = arith.constant 0 : index
    %19 = vector.load %arg7[%c0_14, %c0_15] : memref<384x128xbf16, #tpu.memory_space<vmem>>, vector<384x128xbf16>
    %cst_16 = arith.constant dense<0.000000e+00> : vector<8x128xf32>
    %20 = tpu.matmul %18, %19, %cst_16 {dimension_numbers = #tpu.dot_dimension_numbers<[1], [0], [0], [1], [0, 0, 1, 1], [], []>} : vector<8x384xbf16>, vector<384x128xbf16>, vector<8x128xf32> -> vector<8x128xf32>
    %c0_17 = arith.constant 0 : index
    %c0_18 = arith.constant 0 : index
    %21 = vector.load %arg8[%c0_17, %c0_18] : memref<1x128xf32, #tpu.memory_space<vmem>>, vector<1x128xf32>
    %22 = vector.broadcast %21 : vector<1x128xf32> to vector<8x128xf32>
    %23 = arith.addf %20, %22 : vector<8x128xf32>
    %24 = math.tanh %23 : vector<8x128xf32>
    %25 = vector.broadcast %0 : f32 to vector<8x128xf32>
    %26 = arith.mulf %25, %24 : vector<8x128xf32>
    %c0_19 = arith.constant 0 : index
    %c0_20 = arith.constant 0 : index
    %27 = vector.load %arg9[%c0_19, %c0_20] : memref<8x128xf32, #tpu.memory_space<vmem>>, vector<8x128xf32>
    tpu.vector_store %arg9[%c0_19, %c0_20], %26 {strides = array<i32>} : memref<8x128xf32, #tpu.memory_space<vmem>>, vector<8x128xf32>,
    return
  }
  func.func @transform_0(%arg0: i32) -> (i32, i32) {
    %c0_i32 = arith.constant 0 : i32
    %c0_i32_0 = arith.constant 0 : i32
    %c0_i32_1 = arith.constant 0 : i32
    return %c0_i32, %c0_i32_0 : i32, i32
  }
  func.func @transform_1(%arg0: i32) -> (i32, i32) {
    %c0_i32 = arith.constant 0 : i32
    %c0_i32_0 = arith.constant 0 : i32
    return %arg0, %c0_i32 : i32, i32
  }
  func.func @transform_2(%arg0: i32) -> (i32, i32) {
    %c0_i32 = arith.constant 0 : i32
    %c0_i32_0 = arith.constant 0 : i32
    %c0_i32_1 = arith.constant 0 : i32
    return %c0_i32, %c0_i32_0 : i32, i32
  }
  func.func @transform_3(%arg0: i32) -> (i32, i32) {
    %c0_i32 = arith.constant 0 : i32
    %c0_i32_0 = arith.constant 0 : i32
    %c0_i32_1 = arith.constant 0 : i32
    return %c0_i32, %c0_i32_0 : i32, i32
  }
  func.func @transform_4(%arg0: i32) -> (i32, i32) {
    %c0_i32 = arith.constant 0 : i32
    %c0_i32_0 = arith.constant 0 : i32
    %c0_i32_1 = arith.constant 0 : i32
    return %c0_i32, %c0_i32_0 : i32, i32
  }
  func.func @transform_5(%arg0: i32) -> (i32, i32) {
    %c0_i32 = arith.constant 0 : i32
    %c0_i32_0 = arith.constant 0 : i32
    %c0_i32_1 = arith.constant 0 : i32
    return %c0_i32, %c0_i32_0 : i32, i32
  }
  func.func @transform_6(%arg0: i32) -> (i32, i32) {
    %c0_i32 = arith.constant 0 : i32
    %c0_i32_0 = arith.constant 0 : i32
    %c0_i32_1 = arith.constant 0 : i32
    return %c0_i32, %c0_i32_0 : i32, i32
  }
  func.func @transform_7(%arg0: i32) -> (i32, i32) {
    %c0_i32 = arith.constant 0 : i32
    %c0_i32_0 = arith.constant 0 : i32
    %c0_i32_1 = arith.constant 0 : i32
    return %c0_i32, %c0_i32_0 : i32, i32
  }
  func.func @transform_8(%arg0: i32) -> (i32, i32) {
    %c0_i32 = arith.constant 0 : i32
    %c0_i32_0 = arith.constant 0 : i32
    return %arg0, %c0_i32 : i32, i32
  }
}

</mosaic_0001>

<bundles_post_ra>
// kernel: tpu_custom_call.1
= control target key start
LH: loop header
LB: loop body
LE: loop exit
PB: predicated region body
PF: predicated region fallthrough
CT: control target
= control target key end

     0   :  { %14 = vsyncpa [#allocation4], 0  ;;  %s1969_s0 = inlined_call_operand.<no memory space> [shape: f32[1,1], index: 0, kind: input, shape index: {}]   ;;  %s1970_s1 = inlined_call_operand.hbm [shape: f32[8,16], index: 1, kind: input, shape index: {}]   ;;  %s1971_s2 = inlined_call_operand.hbm [shape: bf16[16,512], index: 2, kind: input, shape index: {}]   ;;  %s1972_s3 = inlined_call_operand.vmem [shape: f32[1,512], index: 3, kind: input, shape index: {}]   ;;  %s1973_s4 = inlined_call_operand.hbm [shape: bf16[512,384], index: 4, kind: input, shape index: {}]   ;;  %s1974_s5 = inlined_call_operand.vmem [shape: f32[1,384], index: 5, kind: input, shape index: {}]   ;;  %s1975_s6 = inlined_call_operand.hbm [shape: bf16[384,128], index: 6, kind: input, shape index: {}]   ;;  %s1976_s7 = inlined_call_operand.vmem [shape: f32[1,128], index: 7, kind: input, shape index: {}]   ;;  %s1977_s8 = inlined_call_operand.hbm [shape: f32[8,128], index: 8, kind: output, shape index: {}]  }
   0x1   :  { %15 = vsyncpa [#allocation7], 0 }
   0x2   :  { %16 = vsyncpa [#allocation10], 0 }
   0x3   :  { %17 = vsyncpa [#allocation5], 0  ;;  %s1857_s27 = smov [#allocation6]  }
   0x4   :  { %s35_s28 = sshll.u32 %s1857_s27, 4  ;;  %s36_s28 = int_to_ptr.vmem [resolvable:$true] %s35_s28 }
   0x5   :  { %s1757_s29 = scalar_lea.vmem %s36_s28, 512  ;;  %p1762_p1 = scmp.lt.s32.totalorder %s36_s28, %s36_s28 }
   0x6   :  { %p1758_p0 = scmp.ne.s32.totalorder %s36_s28, %s1757_s29  ;;  %p1763_p2 = scmp.lt.s32.totalorder %s1757_s29, %s1757_s29 }
   0x8   :  { %p1764_p3 = por %p1763_p2, %p1762_p1 }
   0xa   :  { %p1765_p4 = pnand %p1764_p3, %p1758_p0 }
   0xc   :  { %1768 = shalt.err (!%p1765_p4)
}
   0xd   :  { %s1858_s30 = smov 256   ;;  %s1859_s9 = smov 16  }
   0xe   :  { %41 = dma.hbm_to_vmem [thread:$0]  %s1971_s2, 512, %s36_s28, [#allocation7], %s1858_s30, %s1858_s30, %s1859_s9  }
   0xf   :  { %s1860_s12 = smov [#allocation3]   ;;  %s1861_s14 = smov [#allocation8]  }
  0x10   :  { %s26_s13 = sshll.u32 %s1860_s12, 4  ;;  %s49_s15 = sshll.u32 %s1861_s14, 4  ;;  %s27_s13 = int_to_ptr.vmem [resolvable:$true] %s26_s13  ;;  %s50_s15 = int_to_ptr.vmem [resolvable:$true] %s49_s15 }
  0x11   :  { %s1777_s16 = scalar_lea.vmem %s27_s13, 128  ;;  %p1782_p6 = scmp.lt.s32.totalorder %s27_s13, %s27_s13 }
  0x12   :  { %p1778_p5 = scmp.ne.s32.totalorder %s27_s13, %s1777_s16  ;;  %p1783_p7 = scmp.lt.s32.totalorder %s1777_s16, %s1777_s16 }
  0x14   :  { %p1784_p8 = por %p1783_p7, %p1782_p6 }
  0x16   :  { %p1785_p9 = pnand %p1784_p8, %p1778_p5 }
  0x18   :  { %1788 = shalt.err (!%p1785_p9)
}
  0x19   :  { %29 = dma.hbm_to_vmem [thread:$0]  %s1970_s1, 128, %s27_s13, [#allocation4]  }
  0x1a   :  { %s1797_s19 = scalar_lea.vmem %s50_s15, 12288  ;;  %p1802_p11 = scmp.lt.s32.totalorder %s50_s15, %s50_s15 }
  0x1b   :  { %p1798_p10 = scmp.ne.s32.totalorder %s50_s15, %s1797_s19  ;;  %p1803_p12 = scmp.lt.s32.totalorder %s1797_s19, %s1797_s19 }
  0x1d   :  { %p1804_p13 = por %p1803_p12, %p1802_p11 }
  0x1f   :  { %p1805_p0 = pnand %p1804_p13, %p1798_p10 }
  0x21   :  { %1808 = shalt.err (!%p1805_p0)
}
  0x22   :  { %s1862_s2 = smov 192   ;;  %s1863_s20 = smov 12  }
  0x23   :  { %55 = dma.hbm_to_vmem [thread:$0]  %s1973_s4, 12288, %s50_s15, [#allocation7], %s1862_s2, %s1862_s2, %s1863_s20  }
  0x24   :  { %s1864_s23 = smov [#allocation9]  }
  0x25   :  { %s63_s24 = sshll.u32 %s1864_s23, 4  ;;  %s64_s24 = int_to_ptr.vmem [resolvable:$true] %s63_s24 }
  0x26   :  { %s1817_s25 = scalar_lea.vmem %s64_s24, 3072  ;;  %p1822_p2 = scmp.lt.s32.totalorder %s64_s24, %s64_s24 }
  0x27   :  { %p1818_p1 = scmp.ne.s32.totalorder %s64_s24, %s1817_s25  ;;  %p1823_p3 = scmp.lt.s32.totalorder %s1817_s25, %s1817_s25 }
  0x29   :  { %p1824_p4 = por %p1823_p3, %p1822_p2 }
  0x2b   :  { %p1825_p5 = pnand %p1824_p4, %p1818_p1 }
  0x2d   :  { %1828 = shalt.err (!%p1825_p5)
}
  0x2e   :  { %s1865_s1 = smov 64   ;;  %s1866_s26 = smov 4  }
  0x2f   :  { %69 = dma.hbm_to_vmem [thread:$0]  %s1975_s6, 3072, %s64_s24, [#allocation10], %s1865_s1, %s1865_s1, %s1866_s26  }
  0x30   :  { %1849 = dma.done.wait [#allocation4], 128  }
  0x31   :  { %1850 = vsyncadd [#allocation4], 4294967168 }
  0x32   :  { %1851 = dma.done.wait [#allocation7], 12800  }
  0x33   :  { %1852 = vsyncadd [#allocation7], 4294954496 }
  0x34   :  { %1853 = dma.done.wait [#allocation10], 3072  }
  0x35   :  { %1854 = vsyncadd [#allocation10], 4294964224  ;;  %v1867_v0 = vmov 0   ;;  %v1589_v1 = vld [vmem:[#allocation6 + $0x4] ss:$16 sps:$4 sm:$0xff]   ;;  %v86_v5 = vld [vmem:[#allocation3] sm:$0xff] }
  0x36   :  { %170 = vmatprep.mubr.bf16.mxu0 %v1867_v0  ;;  %211 = vmatprep.mubr.bf16.mxu1 %v1867_v0  ;;  %v1591_v2 = vld [vmem:[#allocation6 + $0xc] ss:$16 sps:$4 sm:$0xff]   ;;  %v1593_v3 = vld [vmem:[#allocation6] ss:$16 sps:$4 sm:$0xff]   ;;  %v1594_v4 = vld [vmem:[#allocation6 + $0x8] ss:$16 sps:$4 sm:$0xff]   ;;  %v87_v6 = vpack.c.bf16 %v86_v5, %v86_v5 }
  0x37   :  { %152 = vmatprep.subr.bf16.mxu0 %v1589_v1  ;;  %193 = vmatprep.subr.bf16.mxu1 %v1591_v2  ;;  %v1595_v7 = vld [vmem:[#allocation8 + $0xa8] ss:$12 sps:$4 sm:$0xff]   ;;  %vm134_vm0 = vcmask 130048   ;;  %v1597_v8 = vld [vmem:[#allocation8 + $0xac] ss:$12 sps:$4 sm:$0xff]   ;;  %vm1869_vm1 = vmmov 0  }
  0x38   :  { %153 = vmatpush1.bf16.msra.mxu0 %v1593_v3  ;;  %194 = vmatpush1.bf16.msra.mxu1 %v1594_v4  ;;  %v1598_v9 = vld [vmem:[#allocation8 + $0x228] ss:$12 sps:$4 sm:$0xff]   ;;  %v1600_v10 = vld [vmem:[#allocation8 + $0x22c] ss:$12 sps:$4 sm:$0xff]   ;;  %v1601_v12 = vld [vmem:[#allocation8 + $0x90] ss:$12 sps:$4 sm:$0xff]  }
  0x39   :  { %885 = vmatprep.subr.bf16.mxu0 %v1597_v8  ;;  %v1603_v11 = vld [vmem:[#allocation8 + $0x94] ss:$12 sps:$4 sm:$0xff]   ;;  %926 = vmatprep.subr.bf16.mxu1 %v1600_v10  ;;  %v1604_v14 = vld [vmem:[#allocation8 + $0x210] ss:$12 sps:$4 sm:$0xff]   ;;  %v1607_v17 = vld [vmem:[#allocation8 + $0x78] ss:$12 sps:$4 sm:$0xff]  }
  0x3a   :  { %v1606_v13 = vld [vmem:[#allocation8 + $0x214] ss:$12 sps:$4 sm:$0xff]   ;;  %v1609_v15 = vld [vmem:[#allocation8 + $0x7c] ss:$12 sps:$4 sm:$0xff]   ;;  %v1610_v18 = vld [vmem:[#allocation8 + $0x1f8] ss:$12 sps:$4 sm:$0xff]  }
  0x3b   :  { %1357 = vmatmul.mubr.msk.bf16.vlgmr.msra.gmra.mxu0 %vm134_vm0, %v87_v6  ;;  %1358 = vmatmul.mubr.msk.bf16.vlgmr.msra.gmra.mxu1 %vm134_vm0, %v87_v6  ;;  %v1612_v16 = vld [vmem:[#allocation8 + $0x1fc] ss:$12 sps:$4 sm:$0xff]   ;;  %v1615_v19 = vld [vmem:[#allocation8 + $0x64] ss:$12 sps:$4 sm:$0xff]   ;;  %v1613_v21 = vld [vmem:[#allocation8 + $0x60] ss:$12 sps:$4 sm:$0xff]  }
  0x3c   :  { %886 = vmatpush1.bf16.msra.mxu0 %v1595_v7  ;;  %927 = vmatpush1.bf16.msra.mxu1 %v1598_v9  ;;  %v1618_v20 = vld [vmem:[#allocation8 + $0x1e4] ss:$12 sps:$4 sm:$0xff]   ;;  %v1616_v22 = vld [vmem:[#allocation8 + $0x1e0] ss:$12 sps:$4 sm:$0xff]   ;;  %v1619_v25 = vld [vmem:[#allocation8 + $0x48] ss:$12 sps:$4 sm:$0xff]   ;;  %v94_v9 = vlaneseq }
  0x3d   :  { %887 = vmatprep.subr.bf16.mxu0 %v1603_v11  ;;  %928 = vmatprep.subr.bf16.mxu1 %v1606_v13  ;;  %v1621_v23 = vld [vmem:[#allocation8 + $0x4c] ss:$12 sps:$4 sm:$0xff]   ;;  %v1622_v26 = vld [vmem:[#allocation8 + $0x1c8] ss:$12 sps:$4 sm:$0xff]   ;;  %v1625_v29 = vld [vmem:[#allocation8 + $0x30] ss:$12 sps:$4 sm:$0xff]  }
  0x3e   :  { %v1624_v24 = vld [vmem:[#allocation8 + $0x1cc] ss:$12 sps:$4 sm:$0xff]   ;;  %v1627_v27 = vld [vmem:[#allocation8 + $0x34] ss:$12 sps:$4 sm:$0xff]   ;;  %v1628_v30 = vld [vmem:[#allocation8 + $0x1b0] ss:$12 sps:$4 sm:$0xff]  }
  0x3f   :  { %v1630_v28 = vld [vmem:[#allocation8 + $0x1b4] ss:$12 sps:$4 sm:$0xff]   ;;  %v1633_v31 = vld [vmem:[#allocation8 + $0x1c] ss:$12 sps:$4 sm:$0xff]   ;;  %v1631_v33 = vld [vmem:[#allocation8 + $0x18] ss:$12 sps:$4 sm:$0xff]  }
  0x40   :  { %888 = vmatpush1.bf16.msra.mxu0 %v1601_v12  ;;  %929 = vmatpush1.bf16.msra.mxu1 %v1604_v14  ;;  %v1636_v32 = vld [vmem:[#allocation8 + $0x19c] ss:$12 sps:$4 sm:$0xff]   ;;  %v1634_v34 = vld [vmem:[#allocation8 + $0x198] ss:$12 sps:$4 sm:$0xff]   ;;  %v1637_v37 = vld [vmem:[#allocation8] ss:$12 sps:$4 sm:$0xff]  }
  0x41   :  { %889 = vmatprep.subr.bf16.mxu0 %v1609_v15  ;;  %930 = vmatprep.subr.bf16.mxu1 %v1612_v16  ;;  %v1639_v35 = vld [vmem:[#allocation8 + $0x4] ss:$12 sps:$4 sm:$0xff]   ;;  %v1640_v38 = vld [vmem:[#allocation8 + $0x180] ss:$12 sps:$4 sm:$0xff]   ;;  %v1643_v41 = vld [vmem:[#allocation8 + $0x168] ss:$12 sps:$4 sm:$0xff]  }
  0x42   :  { %v1642_v36 = vld [vmem:[#allocation8 + $0x184] ss:$12 sps:$4 sm:$0xff]   ;;  %v1645_v39 = vld [vmem:[#allocation8 + $0x16c] ss:$12 sps:$4 sm:$0xff]   ;;  %v1646_v42 = vld [vmem:[#allocation8 + $0x2e8] ss:$12 sps:$4 sm:$0xff]  }
  0x43   :  { %v1648_v40 = vld [vmem:[#allocation8 + $0x2ec] ss:$12 sps:$4 sm:$0xff]   ;;  %v1651_v43 = vld [vmem:[#allocation8 + $0x154] ss:$12 sps:$4 sm:$0xff]   ;;  %v1649_v44 = vld [vmem:[#allocation8 + $0x150] ss:$12 sps:$4 sm:$0xff]  }
  0x44   :  { %890 = vmatpush1.bf16.msra.mxu0 %v1607_v17  ;;  %931 = vmatpush1.bf16.msra.mxu1 %v1610_v18  ;;  %v1654_v45 = vld [vmem:[#allocation8 + $0x2d4] ss:$12 sps:$4 sm:$0xff]   ;;  %v1652_v46 = vld [vmem:[#allocation8 + $0x2d0] ss:$12 sps:$4 sm:$0xff]   ;;  %v1655_v49 = vld [vmem:[#allocation8 + $0x138] ss:$12 sps:$4 sm:$0xff]  }
  0x45   :  { %891 = vmatprep.subr.bf16.mxu0 %v1615_v19  ;;  %932 = vmatprep.subr.bf16.mxu1 %v1618_v20  ;;  %v1657_v47 = vld [vmem:[#allocation8 + $0x13c] ss:$12 sps:$4 sm:$0xff]   ;;  %v1658_v50 = vld [vmem:[#allocation8 + $0x2b8] ss:$12 sps:$4 sm:$0xff]   ;;  %v1661_v53 = vld [vmem:[#allocation8 + $0x120] ss:$12 sps:$4 sm:$0xff]  }
  0x46   :  { %v1660_v48 = vld [vmem:[#allocation8 + $0x2bc] ss:$12 sps:$4 sm:$0xff]   ;;  %v1663_v51 = vld [vmem:[#allocation8 + $0x124] ss:$12 sps:$4 sm:$0xff]   ;;  %v1664_v54 = vld [vmem:[#allocation8 + $0x2a0] ss:$12 sps:$4 sm:$0xff]  }
  0x47   :  { %v1666_v52 = vld [vmem:[#allocation8 + $0x2a4] ss:$12 sps:$4 sm:$0xff]   ;;  %v1669_v55 = vld [vmem:[#allocation8 + $0x10c] ss:$12 sps:$4 sm:$0xff]   ;;  %v1667_v57 = vld [vmem:[#allocation8 + $0x108] ss:$12 sps:$4 sm:$0xff]  }
  0x48   :  { %892 = vmatpush1.bf16.msra.mxu0 %v1613_v21  ;;  %933 = vmatpush1.bf16.msra.mxu1 %v1616_v22  ;;  %v1672_v56 = vld [vmem:[#allocation8 + $0x28c] ss:$12 sps:$4 sm:$0xff]   ;;  %v1670_v58 = vld [vmem:[#allocation8 + $0x288] ss:$12 sps:$4 sm:$0xff]   ;;  %v1673_v61 = vld [vmem:[#allocation8 + $0xf0] ss:$12 sps:$4 sm:$0xff]  }
  0x49   :  { %893 = vmatprep.subr.bf16.mxu0 %v1621_v23  ;;  %934 = vmatprep.subr.bf16.mxu1 %v1624_v24  ;;  %v1675_v59 = vld [vmem:[#allocation8 + $0xf4] ss:$12 sps:$4 sm:$0xff]   ;;  %v1676_v62 = vld [vmem:[#allocation8 + $0x270] ss:$12 sps:$4 sm:$0xff]   ;;  %v1679_v1 = vld [vmem:[#allocation8 + $0xd8] ss:$12 sps:$4 sm:$0xff]  }
  0x4a   :  { %v1678_v60 = vld [vmem:[#allocation8 + $0x274] ss:$12 sps:$4 sm:$0xff]   ;;  %v1681_v63 = vld [vmem:[#allocation8 + $0xdc] ss:$12 sps:$4 sm:$0xff]   ;;  %v1682_v2 = vld [vmem:[#allocation8 + $0x258] ss:$12 sps:$4 sm:$0xff]  }
  0x4b   :  { %v1684_v0 = vld [vmem:[#allocation8 + $0x25c] ss:$12 sps:$4 sm:$0xff]   ;;  %v1687_v3 = vld [vmem:[#allocation8 + $0xc4] ss:$12 sps:$4 sm:$0xff]   ;;  %v1685_v5 = vld [vmem:[#allocation8 + $0xc0] ss:$12 sps:$4 sm:$0xff]  }
  0x4c   :  { %894 = vmatpush1.bf16.msra.mxu0 %v1619_v25  ;;  %935 = vmatpush1.bf16.msra.mxu1 %v1622_v26  ;;  %v1690_v4 = vld [vmem:[#allocation8 + $0x244] ss:$12 sps:$4 sm:$0xff]   ;;  %v1688_v6 = vld [vmem:[#allocation8 + $0x240] ss:$12 sps:$4 sm:$0xff]   ;;  %v1928_v10 = vshrl.u32 %v94_v9, 7  ;;  %s1870_s11 = smov [#allocation11]  }
  0x4d   :  { %895 = vmatprep.subr.bf16.mxu0 %v1627_v27  ;;  %936 = vmatprep.subr.bf16.mxu1 %v1630_v28  ;;  %v1691_v7 = vld [vmem:[#allocation8 + $0x170] ss:$12 sps:$4 sm:$0xff]   ;;  %v92_v13 = vld [vmem:[%s1972_s3] sm:$0xf]  ;;  %s1342_s12 = sshll.u32 %s1870_s11, 4  ;;  %s1343_s12 = int_to_ptr.vmem [resolvable:$true] %s1342_s12 }
  0x4e   :  { %v1692_v8 = vld [vmem:[#allocation8 + $0x2f0] ss:$12 sps:$4 sm:$0xff]   ;;  %v96_v11 = vsub.s32 0, %v1928_v10  ;;  %v104_v12 = vsub.s32 2, %v1928_v10  ;;  %v100_v14 = vsub.s32 1, %v1928_v10  ;;  %v108_v15 = vsub.s32 3, %v1928_v10  ;;  %p1834_p7 = scmp.lt.s32.totalorder %s1343_s12, %s1343_s12 }
  0x4f   :  { %v1726_v9 = vld [vmem:[#allocation9 + $0x30] sm:$0xff]   ;;  %v1455_v10 = vld [vmem:[%s1976_s7] ss:$0 sm:$0xff]  ;;  %s1829_s13 = scalar_lea.vmem %s1343_s12, 128 }
  0x50   :  { %896 = vmatpush1.bf16.msra.mxu0 %v1625_v29  ;;  %937 = vmatpush1.bf16.msra.mxu1 %v1628_v30  ;;  %v97_v16 = vrot.slane %v92_v13, %v96_v11  ;;  %v105_v17 = vrot.slane %v92_v13, %v104_v12  ;;  %v101_v18 = vrot.slane %v92_v13, %v100_v14  ;;  %p1830_p6 = scmp.ne.s32.totalorder %s1343_s12, %s1829_s13  ;;  %p1835_p8 = scmp.lt.s32.totalorder %s1829_s13, %s1829_s13 }
  0x51   :  { %897 = vmatprep.subr.bf16.mxu0 %v1633_v31  ;;  %938 = vmatprep.subr.bf16.mxu1 %v1636_v32  ;;  %v109_v19 = vrot.slane %v92_v13, %v108_v15  ;;  %v1727_v13 = vld [vmem:[#allocation9 + $0x68] sm:$0xff]  }
  0x52   :  { %v1728_v15 = vld [vmem:[#allocation9 + $0x28] sm:$0xff]   ;;  %p1836_p9 = por %p1835_p8, %p1834_p7 }
  0x54   :  { %898 = vmatpush1.bf16.msra.mxu0 %v1631_v33  ;;  %939 = vmatpush1.bf16.msra.mxu1 %v1634_v34  ;;  %p1837_p10 = pnand %p1836_p9, %p1830_p6 }
  0x55   :  { %899 = vmatprep.subr.bf16.mxu0 %v1639_v35  ;;  %940 = vmatprep.subr.bf16.mxu1 %v1642_v36 }
  0x58   :  { %900 = vmatpush1.bf16.msra.mxu0 %v1637_v37  ;;  %941 = vmatpush1.bf16.msra.mxu1 %v1640_v38 }
  0x59   :  { %901 = vmatprep.subr.bf16.mxu0 %v1645_v39  ;;  %942 = vmatprep.subr.bf16.mxu1 %v1648_v40  ;;  %v1693_v39 = vld [vmem:[#allocation8 + $0xb0] ss:$12 sps:$4 sm:$0xff]  }
  0x5a   :  { %v1694_v40 = vld [vmem:[#allocation8 + $0x230] ss:$12 sps:$4 sm:$0xff]  }
  0x5c   :  { %902 = vmatpush2.bf16.msra.mxu0 %v1643_v41  ;;  %943 = vmatpush2.bf16.msra.mxu1 %v1646_v42  ;;  %v1695_v42 = vld [vmem:[#allocation8 + $0x158] ss:$12 sps:$4 sm:$0xff]  }
  0x5d   :  { %903 = vmatprep.subr.bf16.mxu0 %v1651_v43  ;;  %944 = vmatprep.subr.bf16.mxu1 %v1654_v45  ;;  %v1696_v43 = vld [vmem:[#allocation8 + $0x2d8] ss:$12 sps:$4 sm:$0xff]  }
  0x5e   :  { %v1698_v45 = vld [vmem:[#allocation8 + $0x218] ss:$12 sps:$4 sm:$0xff]  }
  0x60   :  { %904 = vmatpush2.bf16.msra.mxu0 %v1649_v44  ;;  %945 = vmatpush2.bf16.msra.mxu1 %v1652_v46  ;;  %v1697_v44 = vld [vmem:[#allocation8 + $0x98] ss:$12 sps:$4 sm:$0xff]   ;;  %v1699_v46 = vld [vmem:[#allocation8 + $0x140] ss:$12 sps:$4 sm:$0xff]  }
  0x61   :  { %905 = vmatprep.subr.bf16.mxu0 %v1657_v47  ;;  %946 = vmatprep.subr.bf16.mxu1 %v1660_v48  ;;  %v1700_v47 = vld [vmem:[#allocation8 + $0x2c0] ss:$12 sps:$4 sm:$0xff]  }
  0x62   :  { %v1701_v48 = vld [vmem:[#allocation8 + $0x80] ss:$12 sps:$4 sm:$0xff]  }
  0x64   :  { %906 = vmatpush2.bf16.msra.mxu0 %v1655_v49  ;;  %947 = vmatpush2.bf16.msra.mxu1 %v1658_v50  ;;  %v1702_v49 = vld [vmem:[#allocation8 + $0x200] ss:$12 sps:$4 sm:$0xff]   ;;  %v1703_v50 = vld [vmem:[#allocation8 + $0x128] ss:$12 sps:$4 sm:$0xff]  }
  0x65   :  { %907 = vmatprep.subr.bf16.mxu0 %v1663_v51  ;;  %948 = vmatprep.subr.bf16.mxu1 %v1666_v52  ;;  %v1704_v51 = vld [vmem:[#allocation8 + $0x2a8] ss:$12 sps:$4 sm:$0xff]  }
  0x66   :  { %v1705_v52 = vld [vmem:[#allocation8 + $0x68] ss:$12 sps:$4 sm:$0xff]  }
  0x68   :  { %908 = vmatpush2.bf16.msra.mxu0 %v1661_v53  ;;  %949 = vmatpush2.bf16.msra.mxu1 %v1664_v54  ;;  %v1706_v53 = vld [vmem:[#allocation8 + $0x1e8] ss:$12 sps:$4 sm:$0xff]   ;;  %v1707_v54 = vld [vmem:[#allocation8 + $0x110] ss:$12 sps:$4 sm:$0xff]  }
  0x69   :  { %909 = vmatprep.subr.bf16.mxu0 %v1669_v55  ;;  %950 = vmatprep.subr.bf16.mxu1 %v1672_v56  ;;  %v1708_v55 = vld [vmem:[#allocation8 + $0x290] ss:$12 sps:$4 sm:$0xff]  }
  0x6a   :  { %v1709_v56 = vld [vmem:[#allocation8 + $0x50] ss:$12 sps:$4 sm:$0xff]  }
  0x6c   :  { %910 = vmatpush2.bf16.msra.mxu0 %v1667_v57  ;;  %951 = vmatpush2.bf16.msra.mxu1 %v1670_v58  ;;  %v1710_v57 = vld [vmem:[#allocation8 + $0x1d0] ss:$12 sps:$4 sm:$0xff]   ;;  %v1711_v58 = vld [vmem:[#allocation8 + $0xf8] ss:$12 sps:$4 sm:$0xff]  }
  0x6d   :  { %911 = vmatprep.subr.bf16.mxu0 %v1675_v59  ;;  %952 = vmatprep.subr.bf16.mxu1 %v1678_v60  ;;  %v1712_v59 = vld [vmem:[#allocation8 + $0x278] ss:$12 sps:$4 sm:$0xff]  }
  0x6e   :  { %v1713_v60 = vld [vmem:[#allocation8 + $0x38] ss:$12 sps:$4 sm:$0xff]  }
  0x70   :  { %912 = vmatpush2.bf16.msra.mxu0 %v1673_v61  ;;  %953 = vmatpush2.bf16.msra.mxu1 %v1676_v62  ;;  %v1714_v61 = vld [vmem:[#allocation8 + $0x1b8] ss:$12 sps:$4 sm:$0xff]   ;;  %v1715_v62 = vld [vmem:[#allocation8 + $0xe0] ss:$12 sps:$4 sm:$0xff]  }
  0x71   :  { %913 = vmatprep.subr.bf16.mxu0 %v1681_v63  ;;  %954 = vmatprep.subr.bf16.mxu1 %v1684_v0  ;;  %v1716_v63 = vld [vmem:[#allocation8 + $0x260] ss:$12 sps:$4 sm:$0xff]  }
  0x72   :  { %v1717_v0 = vld [vmem:[#allocation8 + $0x20] ss:$12 sps:$4 sm:$0xff]  }
  0x74   :  { %914 = vmatpush2.bf16.msra.mxu0 %v1679_v1  ;;  %955 = vmatpush2.bf16.msra.mxu1 %v1682_v2  ;;  %v1718_v1 = vld [vmem:[#allocation8 + $0x1a0] ss:$12 sps:$4 sm:$0xff]   ;;  %v1719_v2 = vld [vmem:[#allocation8 + $0xc8] ss:$12 sps:$4 sm:$0xff]  }
  0x75   :  { %915 = vmatprep.subr.bf16.mxu0 %v1687_v3  ;;  %956 = vmatprep.subr.bf16.mxu1 %v1690_v4  ;;  %v1720_v3 = vld [vmem:[#allocation8 + $0x248] ss:$12 sps:$4 sm:$0xff]  }
  0x76   :  { %v1721_v4 = vld [vmem:[#allocation8 + $0x8] ss:$12 sps:$4 sm:$0xff]  }
  0x78   :  { %916 = vmatpush2.bf16.msra.mxu0 %v1685_v5  ;;  %957 = vmatpush2.bf16.msra.mxu1 %v1688_v6  ;;  %v1722_v5 = vld [vmem:[#allocation8 + $0x188] ss:$12 sps:$4 sm:$0xff]   ;;  %v1723_v6 = vld [vmem:[#allocation9 + $0x78] sm:$0xff]  }
  0x79   :  { %1480 = vmatprep.subr.bf16.mxu0 %v1691_v7  ;;  %1502 = vmatprep.subr.bf16.mxu1 %v1692_v8  ;;  %v1724_v7 = vld [vmem:[#allocation9 + $0x38] sm:$0xff]   ;;  %v1725_v8 = vld [vmem:[#allocation9 + $0x70] sm:$0xff]  }
  0xfb   :  { %v172_v20 = vpop.f32.mrf.mxu0  ;;  %v213_v21 = vpop.f32.mrf.mxu1 }
  0xfc   :  { %v173_v22 = vadd.f32 %v172_v20, %v97_v16  ;;  %v214_v23 = vadd.f32 %v213_v21, %v105_v17  ;;  %v1729_v16 = vld [vmem:[#allocation9 + $0x60] sm:$0xff]   ;;  %v1733_v20 = vld [vmem:[#allocation9 + $0x50] sm:$0xff]  }
  0xfd   :  { %v174_v24 = vpop.f32.mrf.mxu0  ;;  %v215_v25 = vpop.f32.mrf.mxu1  ;;  %v1730_v17 = vld [vmem:[#allocation9 + $0x20] sm:$0xff]   ;;  %v1734_v21 = vld [vmem:[#allocation9 + $0x10] sm:$0xff]  }
  0xfe   :  { %v222_v26 = vmax.f32 %v214_v23, 0.0  ;;  %v175_v27 = vadd.f32 %v174_v24, %v101_v18  ;;  %v216_v28 = vadd.f32 %v215_v25, %v109_v19  ;;  %v220_v29 = vmax.f32 %v173_v22, 0.0  ;;  %v1731_v18 = vld [vmem:[#allocation9 + $0x58] sm:$0xff]   ;;  %v1735_v22 = vld [vmem:[#allocation9 + $0x48] sm:$0xff]   ;;  %v1737_v24 = vld [vmem:[#allocation9 + $0x40] sm:$0xff]  }
  0xff   :  { %v176_v30 = vpop.f32.mrf.mxu0  ;;  %v217_v31 = vpop.f32.mrf.mxu1  ;;  %v1732_v19 = vld [vmem:[#allocation9 + $0x18] sm:$0xff]   ;;  %v1736_v23 = vld [vmem:[#allocation9 + $0x8] sm:$0xff]   ;;  %v1738_v25 = vld [vmem:[#allocation9] sm:$0xff]  }
 0x100   :  { %v221_v32 = vmax.f32 %v175_v27, 0.0  ;;  %v223_v33 = vmax.f32 %v216_v28, 0.0  ;;  %v1943_v34 = vpack.c.bf16 %v222_v26, %v222_v26  ;;  %v1945_v41 = vpack.c.bf16 %v220_v29, %v220_v29  ;;  %v1739_v26 = vld [vmem:[#allocation9 + $0xb8] sm:$0xff]   ;;  %v1740_v28 = vld [vmem:[#allocation9 + $0xb0] sm:$0xff]   ;;  %v1741_v29 = vld [vmem:[#allocation9 + $0xa8] sm:$0xff]  }
 0x101   :  { %v177_v35 = vpop.f32.mrf.mxu0  ;;  %v218_v36 = vpop.f32.mrf.mxu1  ;;  %v1868_v27 = vmov 0.0   ;;  %v1742_v30 = vld [vmem:[#allocation9 + $0xa0] sm:$0xff]   ;;  %v1743_v31 = vld [vmem:[#allocation9 + $0x98] sm:$0xff]  }
 0x102   :  { %v225_v37 = vpack.c.bf16 %v221_v32, %v221_v32  ;;  %v227_v38 = vpack.c.bf16 %v223_v33, %v223_v33  ;;  %v1744_v32 = vld [vmem:[#allocation9 + $0x90] sm:$0xff]   ;;  %v1745_v33 = vld [vmem:[#allocation9 + $0x88] sm:$0xff]   ;;  %v356_v35 = vld [vmem:[%s1974_s5] sm:$0x7] }
 0x103   :  { %v361_v36 = vrot.slane %v356_v35, %v96_v11 }
 0x104   :  { %917 = vmatprep.mubr.bf16.mxu0 %v225_v37  ;;  %958 = vmatprep.mubr.bf16.mxu1 %v227_v38 }
 0x105   :  { %918 = vmatmul.mubr.bf16.vlgmr.msra.gmra.mxu0 %v1945_v41  ;;  %959 = vmatmul.mubr.bf16.vlgmr.msra.gmra.mxu1 %v1943_v34 }
 0x106   :  { %1481 = vmatpush3.bf16.msra.mxu0 %v1693_v39  ;;  %1503 = vmatpush3.bf16.msra.mxu1 %v1694_v40 }
 0x107   :  { %999 = vmatprep.mubr.bf16.mxu0 %v225_v37  ;;  %1039 = vmatprep.mubr.bf16.mxu1 %v227_v38  ;;  %v365_v37 = vrot.slane %v356_v35, %v100_v14 }
 0x108   :  { %1482 = vmatprep.subr.bf16.mxu0 %v1695_v42  ;;  %1504 = vmatprep.subr.bf16.mxu1 %v1696_v43 }
 0x10a   :  { %1483 = vmatpush3.bf16.msra.mxu0 %v1697_v44  ;;  %1505 = vmatpush3.bf16.msra.mxu1 %v1698_v45 }
 0x10b   :  { %1484 = vmatprep.subr.bf16.mxu0 %v1699_v46  ;;  %1506 = vmatprep.subr.bf16.mxu1 %v1700_v47 }
 0x10e   :  { %1485 = vmatpush3.bf16.msra.mxu0 %v1701_v48  ;;  %1507 = vmatpush3.bf16.msra.mxu1 %v1702_v49 }
 0x10f   :  { %1486 = vmatprep.subr.bf16.mxu0 %v1703_v50  ;;  %1508 = vmatprep.subr.bf16.mxu1 %v1704_v51 }
 0x112   :  { %1487 = vmatpush3.bf16.msra.mxu0 %v1705_v52  ;;  %1509 = vmatpush3.bf16.msra.mxu1 %v1706_v53 }
 0x113   :  { %1488 = vmatprep.subr.bf16.mxu0 %v1707_v54  ;;  %1510 = vmatprep.subr.bf16.mxu1 %v1708_v55  ;;  %v369_v54 = vrot.slane %v356_v35, %v104_v12 }
 0x116   :  { %1489 = vmatpush3.bf16.msra.mxu0 %v1709_v56  ;;  %1511 = vmatpush3.bf16.msra.mxu1 %v1710_v57 }
 0x117   :  { %1490 = vmatprep.subr.bf16.mxu0 %v1711_v58  ;;  %1512 = vmatprep.subr.bf16.mxu1 %v1712_v59 }
 0x11a   :  { %1491 = vmatpush3.bf16.msra.mxu0 %v1713_v60  ;;  %1513 = vmatpush3.bf16.msra.mxu1 %v1714_v61 }
 0x11b   :  { %1492 = vmatprep.subr.bf16.mxu0 %v1715_v62  ;;  %1514 = vmatprep.subr.bf16.mxu1 %v1716_v63 }
 0x11e   :  { %1493 = vmatpush3.bf16.msra.mxu0 %v1717_v0  ;;  %1515 = vmatpush3.bf16.msra.mxu1 %v1718_v1 }
 0x11f   :  { %1494 = vmatprep.subr.bf16.mxu0 %v1719_v2  ;;  %1516 = vmatprep.subr.bf16.mxu1 %v1720_v3 }
 0x122   :  { %1495 = vmatpush3.bf16.msra.mxu0 %v1721_v4  ;;  %1517 = vmatpush3.bf16.msra.mxu1 %v1722_v5 }
 0x123   :  { %1524 = vmatprep.subr.bf16.mxu0 %v1723_v6  ;;  %1555 = vmatprep.subr.bf16.mxu1 %v1868_v27 }
 0x125   :  { %1000 = vmatmul.mubr.bf16.vlgmr.msra.gmra.mxu0 %v1945_v41  ;;  %1040 = vmatmul.mubr.bf16.vlgmr.msra.gmra.mxu1 %v1943_v34  ;;  %v1746_v34 = vld [vmem:[#allocation9 + $0x80] sm:$0xff]  }
 0x126   :  { %1525 = vmatpush3.bf16.msra.mxu0 %v1724_v7  ;;  %1556 = vmatpush3.bf16.msra.mxu1 %v1739_v26 }
 0x127   :  { %1526 = vmatprep.subr.bf16.mxu0 %v1725_v8  ;;  %1557 = vmatprep.subr.bf16.mxu1 %v1868_v27 }
 0x128   :  { %1571 = vmatprep.mubr.msk.bf16.mxu1 %vm1869_vm1, %v1868_v27 }
 0x12a   :  { %1527 = vmatpush3.bf16.msra.mxu0 %v1726_v9  ;;  %1558 = vmatpush3.bf16.msra.mxu1 %v1740_v28 }
 0x12b   :  { %1528 = vmatprep.subr.bf16.mxu0 %v1727_v13  ;;  %1559 = vmatprep.subr.bf16.mxu1 %v1868_v27 }
 0x12e   :  { %1529 = vmatpush3.bf16.msra.mxu0 %v1728_v15  ;;  %1560 = vmatpush3.bf16.msra.mxu1 %v1741_v29 }
 0x12f   :  { %1530 = vmatprep.subr.bf16.mxu0 %v1729_v16  ;;  %1561 = vmatprep.subr.bf16.mxu1 %v1868_v27 }
 0x132   :  { %1531 = vmatpush3.bf16.msra.mxu0 %v1730_v17  ;;  %1562 = vmatpush3.bf16.msra.mxu1 %v1742_v30  ;;  %v1333_v17 = vstv %s1969_s0 }
 0x133   :  { %1532 = vmatprep.subr.bf16.mxu0 %v1731_v18  ;;  %1563 = vmatprep.subr.bf16.mxu1 %v1868_v27 }
 0x136   :  { %1533 = vmatpush3.bf16.msra.mxu0 %v1732_v19  ;;  %1564 = vmatpush3.bf16.msra.mxu1 %v1743_v31 }
 0x137   :  { %1534 = vmatprep.subr.bf16.mxu0 %v1733_v20  ;;  %1565 = vmatprep.subr.bf16.mxu1 %v1868_v27 }
 0x13a   :  { %1535 = vmatpush3.bf16.msra.mxu0 %v1734_v21  ;;  %1566 = vmatpush3.bf16.msra.mxu1 %v1744_v32 }
 0x13b   :  { %1536 = vmatprep.subr.bf16.mxu0 %v1735_v22  ;;  %1567 = vmatprep.subr.bf16.mxu1 %v1868_v27 }
 0x13e   :  { %1537 = vmatpush3.bf16.msra.mxu0 %v1736_v23  ;;  %1568 = vmatpush3.bf16.msra.mxu1 %v1745_v33 }
 0x13f   :  { %1538 = vmatprep.subr.bf16.mxu0 %v1737_v24  ;;  %1569 = vmatprep.subr.bf16.mxu1 %v1868_v27 }
 0x142   :  { %1539 = vmatpush3.bf16.msra.mxu0 %v1738_v25  ;;  %1570 = vmatpush3.bf16.msra.mxu1 %v1746_v34 }
 0x1c5   :  { %v919_v38 = vpop.f32.mrf.mxu0  ;;  %v960_v39 = vpop.f32.mrf.mxu1 }
 0x1c6   :  { %v920_v40 = vadd.f32 %v919_v38, %v361_v36 }
 0x1c7   :  { %v921_v41 = vpop.f32.mrf.mxu0  ;;  %v962_v42 = vpop.f32.mrf.mxu1 }
 0x1c8   :  { %v961_v43 = vadd.f32 %v960_v39, %v920_v40  ;;  %v922_v44 = vadd.f32 %v921_v41, %v365_v37 }
 0x1c9   :  { %v923_v45 = vpop.f32.mrf.mxu0  ;;  %v964_v46 = vpop.f32.mrf.mxu1 }
 0x1ca   :  { %v963_v47 = vadd.f32 %v962_v42, %v922_v44  ;;  %v1047_v48 = vmax.f32 %v961_v43, 0.0 }
 0x1cb   :  { %v924_v49 = vpop.f32.mrf.mxu0  ;;  %v965_v50 = vpop.f32.mrf.mxu1 }
 0x1cc   :  { %v1048_v51 = vmax.f32 %v963_v47, 0.0  ;;  %v1050_v53 = vpack.c.bf16 %v1047_v48, %v1047_v48 }
 0x1ce   :  { %v1051_v52 = vpack.c.bf16 %v1048_v51, %v1048_v51 }
 0x1d0   :  { %1284 = vmatprep.mubr.bf16.mxu0 %v1051_v52 }
 0x1d1   :  { %1285 = vmatmul.mubr.bf16.vlgmr.msra.gmra.mxu0 %v1050_v53 }
 0x1e5   :  { %v1496_v11 = vpop.f32.mrf.mxu0  ;;  %v1518_v14 = vpop.f32.mrf.mxu1 }
 0x1e7   :  { %v1497_v55 = vpop.f32.mrf.mxu0  ;;  %v1519_v56 = vpop.f32.mrf.mxu1 }
 0x1e8   :  { %v1498_v57 = vadd.f32 %v1497_v55, %v1496_v11  ;;  %v1520_v61 = vadd.f32 %v1519_v56, %v1518_v14 }
 0x1e9   :  { %v1499_v58 = vpop.f32.mrf.mxu0  ;;  %v1521_v59 = vpop.f32.mrf.mxu1 }
 0x1ea   :  { %v1002_v60 = vadd.f32 %v1498_v57, %v369_v54 }
 0x1eb   :  { %v1500_v62 = vpop.f32.mrf.mxu0  ;;  %v1522_v63 = vpop.f32.mrf.mxu1 }
 0x1ec   :  { %v1042_v0 = vadd.f32 %v1520_v61, %v1002_v60 }
 0x1ee   :  { %v1049_v1 = vmax.f32 %v1042_v0, 0.0 }
 0x1f0   :  { %v1052_v2 = vpack.c.bf16 %v1049_v1, %v1049_v1 }
 0x1f2   :  { %1572 = vmatmul.mubr.bf16.vlgmr.msra.gmra.mxu1 %v1052_v2 }
 0x291   :  { %v1540_v3 = vpop.f32.mrf.mxu0 }
 0x293   :  { %v1541_v4 = vpop.f32.mrf.mxu0 }
 0x294   :  { %v1542_v7 = vadd.f32 %v1541_v4, %v1540_v3 }
 0x295   :  { %v1543_v5 = vpop.f32.mrf.mxu0 }
 0x296   :  { %v1287_v12 = vadd.f32 %v1542_v7, %v1455_v10 }
 0x297   :  { %v1544_v6 = vpop.f32.mrf.mxu0 }
 0x2b2   :  { %v1326_v8 = vpop.f32.mrf.mxu1 }
 0x2b3   :  { %v1327_v9 = vadd.f32 %v1326_v8, %v1287_v12 }
 0x2b4   :  { %v1573_v13 = vpop.f32.mrf.mxu1 }
 0x2b5   :  { %1747 = vtanh.f32 %v1327_v9 }
 0x2b6   :  { %v1329_v15 = vpop.f32.mrf.mxu1 }
 0x2b8   :  { %v1574_v16 = vpop.f32.mrf.mxu1 }
 0x2c2   :  { %v1748_v18 = vpop.eup %1747 }
 0x2c3   :  { %v1334_v19 = vmul.f32 %v1748_v18, %v1333_v17 }
 0x2c5   :  { %1335 = vst [vmem:[#allocation11] sm:$0xff] %v1334_v19 }
 0x2c6   :  { %1840 = shalt.err (!%p1837_p10)
}
 0x2c7   :  { %1345 = dma.vmem_to_hbm [thread:$0]  %s1343_s12, 128, %s1977_s8, [#allocation5]  }
 0x2c8   :  { %1855 = dma.done.wait [#allocation5], 128  }
 0x2c9   :  { %1856 = vsyncadd [#allocation5], 4294967168 }
 0x2ca   :  { %1349 = vsyncpa [#allocation4], 1 }
 0x2cb   :  { %1350 = vsyncpa [#allocation7], 1 }
 0x2cc   :  { %1351 = vsyncpa [#allocation10], 1 }
 0x2cd   :  { %1352 = vsyncpa [#allocation5], 1 }

</bundles_post_ra>
